<compile_context>
chip_gen: v7x
topology: tpu7x:2x2x1
jax: 0.10.0
libtpu: 0.0.40
codegen_flags: <defaults>
</compile_context>

<pallas_src>
import functools

import jax
import jax.numpy as jnp
from jax.experimental import pallas as pl
from jax.experimental.pallas import tpu as pltpu

_LANES = 128
# 4096 rows x 128 lanes x 4 B = 2 MiB per f32 input block.
# 2 inputs x 2 pipeline buffers = 8 MiB VMEM -> safe on v5e/v6e/v7x defaults.
_MAX_BLOCK_ROWS = 4096


def _cmrl_kernel(out_ref, tgt_ref, psum_ref, *, need_mask, num_tiles,
                 valid_rows_last):
    o = jnp.abs(out_ref[...].astype(jnp.float32))
    t = jnp.maximum(jnp.abs(tgt_ref[...].astype(jnp.float32)), 0.0005)
    # EUP reciprocal + VPU multiply instead of a full-rate VPU divide.
    loss = jnp.where(t < 0.001, o, o * pl.reciprocal(t, approx=False))

    if need_mask:
        # Only the ragged last block contains rows past the true extent
        # (Pallas fills them with unspecified data). Mask with block-local
        # row indices against a Python-constant valid-row count; gated with
        # pl.when so all other blocks pay zero mask cost.
        is_last = pl.program_id(0) == (num_tiles - 1)

        @pl.when(is_last)
        def _():
            ridx = jax.lax.broadcasted_iota(jnp.int32, loss.shape, 0)
            masked = jnp.where(ridx < valid_rows_last, loss, jnp.float32(0.0))
            psum_ref[...] = jnp.sum(masked, axis=0, keepdims=True)

        @pl.when(jnp.logical_not(is_last))
        def _():
            psum_ref[...] = jnp.sum(loss, axis=0, keepdims=True)
    else:
        # Per-lane partial sums for this block (sublane-only reduction).
        psum_ref[...] = jnp.sum(loss, axis=0, keepdims=True)


def conditional_mean_relative_loss(output, target, *,
                                   max_block_rows=_MAX_BLOCK_ROWS):
    assert output.shape == target.shape, "output/target shape mismatch"
    n_elems = output.size

    out_flat = output.reshape(-1)
    tgt_flat = target.reshape(-1)

    rows = n_elems // _LANES
    main = rows * _LANES
    tail = n_elems - main

    total = jnp.float32(0.0)

    if rows > 0:
        # Free bitcast reshape of the leading lane-aligned prefix; no padding
        # copy of the full arrays.
        out2d = out_flat[:main].reshape(rows, _LANES)
        tgt2d = tgt_flat[:main].reshape(rows, _LANES)

        block_rows = rows if rows <= max_block_rows else max_block_rows
        num_tiles = pl.cdiv(rows, block_rows)
        valid_rows_last = rows - (num_tiles - 1) * block_rows
        need_mask = (rows % block_rows) != 0

        partials = pl.pallas_call(
            functools.partial(
                _cmrl_kernel,
                need_mask=need_mask,
                num_tiles=num_tiles,
                valid_rows_last=valid_rows_last,
            ),
            out_shape=jax.ShapeDtypeStruct((num_tiles, _LANES), jnp.float32),
            grid_spec=pltpu.PrefetchScalarGridSpec(
                num_scalar_prefetch=0,
                grid=(num_tiles,),
                in_specs=[
                    pl.BlockSpec((block_rows, _LANES), lambda i: (i, 0)),
                    pl.BlockSpec((block_rows, _LANES), lambda i: (i, 0)),
                ],
                out_specs=pl.BlockSpec((1, _LANES), lambda i: (i, 0)),
            ),
            compiler_params=pltpu.CompilerParams(
                dimension_semantics=("parallel",),
            ),
        )(out2d, tgt2d)

        total = total + jnp.sum(partials)

    if tail:
        # <=127-element ragged tail handled with plain jnp in the wrapper.
        o_t = jnp.abs(out_flat[main:].astype(jnp.float32))
        t_t = jnp.maximum(jnp.abs(tgt_flat[main:].astype(jnp.float32)), 0.0005)
        loss_t = jnp.where(t_t < 0.001, o_t, o_t / t_t)
        total = total + jnp.sum(loss_t)

    return total / jnp.float32(n_elems)


def _reference(output, target):
    abs_out = jnp.abs(output.astype(jnp.float32))
    abs_tgt = jnp.maximum(jnp.abs(target.astype(jnp.float32)), 0.0005)
    loss = jnp.where(abs_tgt < 0.001, abs_out, abs_out / abs_tgt)
    return jnp.mean(loss)


if __name__ == "__main__":
    key = jax.random.PRNGKey(0)
    keys = jax.random.split(key, 6)

    # 1) Small NCHW-like shape (lane-aligned): no tail, no mask, single tile.
    shape = (2, 4, 16, 16)
    output = jax.random.normal(keys[0], shape, dtype=jnp.float32) * 0.01
    target = jax.random.normal(keys[1], shape, dtype=jnp.float32) * 0.01
    got = jax.block_until_ready(conditional_mean_relative_loss(output, target))
    want = jax.block_until_ready(_reference(output, target))
    assert jnp.allclose(got, want, rtol=1e-5, atol=1e-6), (got, want)

    # 2) Ragged shape (315 elements): kernel covers 2 rows, 59-element jnp tail.
    shape2 = (5, 7, 9)
    output2 = jax.random.normal(keys[2], shape2, dtype=jnp.float32) * 0.01
    target2 = jax.random.normal(keys[3], shape2, dtype=jnp.float32) * 0.01
    got2 = jax.block_until_ready(conditional_mean_relative_loss(output2, target2))
    want2 = jax.block_until_ready(_reference(output2, target2))
    assert jnp.allclose(got2, want2, rtol=1e-5, atol=1e-6), (got2, want2)

    # 3) Multi-tile with ragged last block (forces the pl.when mask path):
    #    4644 elements -> 36 rows (3 tiles of 16 rows, last has 4 valid) + 36 tail.
    shape3 = (4, 9, 129)
    output3 = jax.random.normal(keys[4], shape3, dtype=jnp.float32) * 0.01
    target3 = jax.random.normal(keys[5], shape3, dtype=jnp.float32) * 0.01
    got3 = jax.block_until_ready(
        conditional_mean_relative_loss(output3, target3, max_block_rows=16))
    want3 = jax.block_until_ready(_reference(output3, target3))
    assert jnp.allclose(got3, want3, rtol=1e-5, atol=1e-6), (got3, want3)

    print("KERNEL_OK")
</pallas_src>

<mosaic_0001>
module attributes {stable_mosaic.version = 11 : i64} {
  func.func @_cmrl_kernel(%arg0: i32, %arg1: memref<16x128xf32, #tpu.memory_space<vmem>>, %arg2: memref<16x128xf32, #tpu.memory_space<vmem>>, %arg3: memref<1x128xf32, #tpu.memory_space<vmem>>) attributes {dimension_semantics = [#tpu.dimension_semantics<parallel>], iteration_bounds = array<i64: 1>, scalar_prefetch = 0 : i64, scratch_operands = 0 : i64, tpu.core_type = #tpu.core_type<tc>, window_params = [{transform_indices = @transform_0, window_bounds = array<i64: 16, 128>}, {transform_indices = @transform_1, window_bounds = array<i64: 16, 128>}, {transform_indices = @transform_2, window_bounds = array<i64: 1, 128>}]} {
    %c0 = arith.constant 0 : index
    %c0_0 = arith.constant 0 : index
    %0 = vector.load %arg1[%c0, %c0_0] : memref<16x128xf32, #tpu.memory_space<vmem>>, vector<16x128xf32>
    %1 = math.absf %0 : vector<16x128xf32>
    %c0_1 = arith.constant 0 : index
    %c0_2 = arith.constant 0 : index
    %2 = vector.load %arg2[%c0_1, %c0_2] : memref<16x128xf32, #tpu.memory_space<vmem>>, vector<16x128xf32>
    %3 = math.absf %2 : vector<16x128xf32>
    %cst = arith.constant 5.000000e-04 : f32
    %4 = vector.broadcast %cst : f32 to vector<16x128xf32>
    %5 = arith.maximumf %3, %4 : vector<16x128xf32>
    %cst_3 = arith.constant 1.000000e-03 : f32
    %6 = vector.broadcast %cst_3 : f32 to vector<16x128xf32>
    %7 = arith.cmpf olt, %5, %6 : vector<16x128xf32>
    %8 = tpu.reciprocal %5 : vector<16x128xf32> -> vector<16x128xf32>
    %9 = arith.mulf %1, %8 : vector<16x128xf32>
    %10 = arith.select %7, %1, %9 : vector<16x128xi1>, vector<16x128xf32>
    %cst_4 = arith.constant dense<0.000000e+00> : vector<128xf32>
    %11 = vector.multi_reduction <add>, %10, %cst_4 [0] : vector<16x128xf32> to vector<128xf32>
    %12 = vector.shape_cast %11 : vector<128xf32> to vector<1x128xf32>
    %c0_5 = arith.constant 0 : index
    %c0_6 = arith.constant 0 : index
    %13 = vector.load %arg3[%c0_5, %c0_6] : memref<1x128xf32, #tpu.memory_space<vmem>>, vector<1x128xf32>
    tpu.vector_store %arg3[%c0_5, %c0_6], %12 {strides = array<i32>} : memref<1x128xf32, #tpu.memory_space<vmem>>, vector<1x128xf32>,
    return
  }
  func.func @transform_0(%arg0: i32) -> (i32, i32) {
    %c0_i32 = arith.constant 0 : i32
    %c0_i32_0 = arith.constant 0 : i32
    return %arg0, %c0_i32 : i32, i32
  }
  func.func @transform_1(%arg0: i32) -> (i32, i32) {
    %c0_i32 = arith.constant 0 : i32
    %c0_i32_0 = arith.constant 0 : i32
    return %arg0, %c0_i32 : i32, i32
  }
  func.func @transform_2(%arg0: i32) -> (i32, i32) {
    %c0_i32 = arith.constant 0 : i32
    %c0_i32_0 = arith.constant 0 : i32
    return %arg0, %c0_i32 : i32, i32
  }
}

</mosaic_0001>

<bundles_post_ra>
// kernel: tpu_custom_call.1
= control target key start
LH: loop header
LB: loop body
LE: loop exit
PB: predicated region body
PF: predicated region fallthrough
CT: control target
= control target key end

     0   :  { %7 = vsyncpa [#allocation3], 0  ;;  %s219_s0 = inlined_call_operand.hbm [shape: f32[16,128], index: 0, kind: input, shape index: {}]   ;;  %s220_s1 = inlined_call_operand.hbm [shape: f32[16,128], index: 1, kind: input, shape index: {}]   ;;  %s221_s2 = inlined_call_operand.hbm [shape: f32[1,128], index: 2, kind: output, shape index: {}]  }
   0x1   :  { %8 = vsyncpa [#allocation6], 0 }
   0x2   :  { %9 = vsyncpa [#allocation4], 0  ;;  %s163_s9 = smov [#allocation2]   ;;  %s91_s13 = scalar_lea.hbm %s219_s0, 256 }
   0x3   :  { %s15_s10 = sshll.u32 %s163_s9, 4  ;;  %p92_p0 = scmp.ne.s32.totalorder %s219_s0, %s91_s13  ;;  %s16_s10 = int_to_ptr.vmem [resolvable:$true] %s15_s10 }
   0x4   :  { %p95_p1 = scmp.lt.u32.totalorder %s91_s13, %s219_s0 }
   0x6   :  { %p97_p2 = pnand %p95_p1, %p92_p0 }
   0x8   :  { %100 = shalt.err (!%p97_p2)
}
   0x9   :  { %s101_s18 = scalar_lea.vmem %s16_s10, 256  ;;  %p106_p4 = scmp.lt.s32.totalorder %s16_s10, %s16_s10 }
   0xa   :  { %p102_p3 = scmp.ne.s32.totalorder %s16_s10, %s101_s18  ;;  %p107_p5 = scmp.lt.s32.totalorder %s101_s18, %s101_s18 }
   0xc   :  { %p108_p6 = por %p107_p5, %p106_p4 }
   0xe   :  { %p109_p7 = pnand %p108_p6, %p102_p3 }
  0x10   :  { %112 = shalt.err (!%p109_p7)
}
  0x11   :  { %s164_s19 = smov 128   ;;  %s165_s20 = smov 8  }
  0x12   :  { %21 = dma.hbm_to_vmem [thread:$0]  %s219_s0, 256, %s16_s10, [#allocation3], %s164_s19, %s164_s19, %s165_s20  }
  0x13   :  { %s166_s23 = smov [#allocation5]   ;;  %s113_s27 = scalar_lea.hbm %s220_s1, 256 }
  0x14   :  { %s27_s24 = sshll.u32 %s166_s23, 4  ;;  %p114_p8 = scmp.ne.s32.totalorder %s220_s1, %s113_s27  ;;  %s28_s24 = int_to_ptr.vmem [resolvable:$true] %s27_s24 }
  0x15   :  { %p117_p9 = scmp.lt.u32.totalorder %s113_s27, %s220_s1 }
  0x17   :  { %p119_p10 = pnand %p117_p9, %p114_p8 }
  0x19   :  { %122 = shalt.err (!%p119_p10)
}
  0x1a   :  { %s123_s4 = scalar_lea.vmem %s28_s24, 256  ;;  %p128_p12 = scmp.lt.s32.totalorder %s28_s24, %s28_s24 }
  0x1b   :  { %p124_p11 = scmp.ne.s32.totalorder %s28_s24, %s123_s4  ;;  %p129_p13 = scmp.lt.s32.totalorder %s123_s4, %s123_s4 }
  0x1d   :  { %p130_p0 = por %p129_p13, %p128_p12 }
  0x1f   :  { %p131_p1 = pnand %p130_p0, %p124_p11 }
  0x21   :  { %134 = shalt.err (!%p131_p1)
}
  0x22   :  { %33 = dma.hbm_to_vmem [thread:$0]  %s220_s1, 256, %s28_s24, [#allocation6], %s164_s19, %s164_s19, %s165_s20  }
  0x23   :  { %157 = dma.done.wait [#allocation3], 256  }
  0x24   :  { %158 = vsyncadd [#allocation3], 4294967040 }
  0x25   :  { %159 = dma.done.wait [#allocation6], 256  }
  0x26   :  { %160 = vsyncadd [#allocation6], 4294967040  ;;  %v44_v0 = vld [vmem:[#allocation5] sm:$0xff]  ;;  %v45_v1 = vld [vmem:[#allocation5 + $0x8] sm:$0xff]  ;;  %s167_s1 = smov [#allocation7]  }
  0x27   :  { %v46_v2 = vand.u32 2147483647, %v44_v0  ;;  %v47_v3 = vand.u32 2147483647, %v45_v1  ;;  %v40_v6 = vld [vmem:[#allocation2] sm:$0xff]  ;;  %v41_v7 = vld [vmem:[#allocation2 + $0x8] sm:$0xff] }
  0x28   :  { %v42_v8 = vand.u32 2147483647, %v40_v6  ;;  %v43_v9 = vand.u32 2147483647, %v41_v7  ;;  %s72_s6 = sshll.u32 %s167_s1, 4  ;;  %s73_s6 = int_to_ptr.vmem [resolvable:$true] %s72_s6 }
  0x29   :  { %v48_v4 = vmax.f32 %v46_v2, 0.0005  ;;  %v49_v5 = vmax.f32 %v47_v3, 0.0005  ;;  %s135_s7 = scalar_lea.vmem %s73_s6, 16  ;;  %s139_s8 = scalar_lea.vmem %s73_s6, 32 }
  0x2a   :  { %p136_p2 = scmp.ne.s32.totalorder %s73_s6, %s135_s7  ;;  %p140_p3 = scmp.lt.s32.totalorder %s73_s6, %s73_s6 }
  0x2b   :  { %87 = vrcp.f32 %v48_v4  ;;  %vm50_vm0 = vcmp.lt.f32.partialorder %v48_v4, 0.001  ;;  %vm51_vm1 = vcmp.lt.f32.partialorder %v49_v5, 0.001  ;;  %p141_p4 = scmp.lt.s32.totalorder %s139_s8, %s135_s7 }
  0x2c   :  { %89 = vrcp.f32 %v49_v5 }
  0x2d   :  { %p142_p5 = por %p141_p4, %p140_p3 }
  0x2f   :  { %p143_p6 = pnand %p142_p5, %p136_p2 }
  0x35   :  { %v88_v10 = vpop.eup %87 }
  0x36   :  { %v90_v11 = vpop.eup %89  ;;  %v54_v12 = vmul.f32 %v88_v10, %v42_v8 }
  0x37   :  { %v55_v13 = vmul.f32 %v90_v11, %v43_v9 }
  0x38   :  { %v56_v14 = vsel %vm50_vm0, %v42_v8, %v54_v12 }
  0x39   :  { %v57_v15 = vsel %vm51_vm1, %v43_v9, %v55_v13 }
  0x3a   :  { %v58_v16 = vadd.f32 %v57_v15, %v56_v14 }
  0x3c   :  { %v59_v17 = vrot.slane %v58_v16, 4 }
  0x3e   :  { %v60_v18 = vadd.f32 %v59_v17, %v58_v16 }
  0x40   :  { %v61_v19 = vrot.slane %v60_v18, 2 }
  0x42   :  { %v62_v20 = vadd.f32 %v61_v19, %v60_v18 }
  0x44   :  { %v63_v21 = vrot.slane %v62_v20, 1 }
  0x46   :  { %v64_v22 = vadd.f32 %v63_v21, %v62_v20 }
  0x48   :  { %65 = vst [vmem:[#allocation7] sm:$0x1] %v64_v22 }
  0x49   :  { %146 = shalt.err (!%p143_p6)
}
  0x4a   :  { %s147_s11 = scalar_lea.hbm %s221_s2, 16 }
  0x4b   :  { %p148_p7 = scmp.ne.s32.totalorder %s221_s2, %s147_s11  ;;  %p151_p8 = scmp.lt.u32.totalorder %s147_s11, %s221_s2 }
  0x4d   :  { %p153_p9 = pnand %p151_p8, %p148_p7 }
  0x4f   :  { %156 = shalt.err (!%p153_p9)
}
  0x50   :  { %75 = dma.vmem_to_hbm [thread:$0]  %s73_s6, 16, %s221_s2, [#allocation4]  }
  0x51   :  { %161 = dma.done.wait [#allocation4], 16  }
  0x52   :  { %162 = vsyncadd [#allocation4], 4294967280 }
  0x53   :  { %79 = vsyncpa [#allocation3], 1 }
  0x54   :  { %80 = vsyncpa [#allocation6], 1 }
  0x55   :  { %81 = vsyncpa [#allocation4], 1 }

</bundles_post_ra>
